<compile_context>
chip_gen: v7x
topology: tpu7x:2x2x1
jax: 0.10.0
libtpu: 0.0.40
codegen_flags: <defaults>
</compile_context>

<pallas_src>
import functools

import jax
import jax.numpy as jnp
from jax.experimental import pallas as pl
from jax.experimental.pallas import tpu as pltpu


def conv_relu_maxpool_kernel(x_ref, w_ref, pooled_ref, *, H, W):
    """One batch image per grid step.

    x_ref:      (H+2, W+2, Cin) bf16  zero-padded NHWC activation (one image)
    w_ref:      (9, Cin, Cout)  bf16  conv weights, tap-major (k = dy*3 + dx)
    pooled_ref: (1, 1, Cout)    f32   ReLU + global-spatial-max output row
    """
    Cin = x_ref.shape[-1]
    Cout = w_ref.shape[-1]

    # 3x3 conv as nine tap matmuls (K = Cin) accumulated in f32 -- no im2col.
    acc = jnp.zeros((H * W, Cout), dtype=jnp.float32)
    for k in range(9):
        dy, dx = divmod(k, 3)
        patch = x_ref[dy:dy + H, dx:dx + W, :].reshape(H * W, Cin)
        acc = acc + jnp.dot(patch, w_ref[k], preferred_element_type=jnp.float32)

    # ReLU then AdaptiveMaxPool2d((1,1)): global max over the spatial axis.
    acc = jnp.maximum(acc, 0.0)
    pooled_ref[...] = jnp.max(acc, axis=0).reshape(1, 1, Cout)


def batchnorm1d_kernel(pooled_ref, gamma_ref, beta_ref, o_ref):
    """BatchNorm1d, training mode: batch mean, biased variance, eps=2e-5."""
    pooled = pooled_ref[...]
    mean = jnp.mean(pooled, axis=0, keepdims=True)
    var = jnp.mean((pooled - mean) ** 2, axis=0, keepdims=True)
    inv = jax.lax.rsqrt(var + 2e-5)
    o_ref[...] = (pooled - mean) * inv * gamma_ref[...] + beta_ref[...]


@jax.jit
def feature_attention_net(x_nchw, w_oihw, gamma, beta):
    """x_nchw: (B, Cin, H, W) f32; w_oihw: (Cout, Cin, 3, 3) f32 (bias=False);
    gamma/beta: (1, Cout) f32 BatchNorm1d affine params."""
    B, Cin, H, W = x_nchw.shape
    Cout = w_oihw.shape[0]

    # Layout prep (fused by jit): NCHW -> NHWC, 1-px zero pad, bf16 operands.
    x_pad = jnp.pad(jnp.transpose(x_nchw, (0, 2, 3, 1)),
                    ((0, 0), (1, 1), (1, 1), (0, 0))).astype(jnp.bfloat16)
    # (Cout, Cin, 3, 3) -> (3, 3, Cin, Cout) -> (9, Cin, Cout), tap-major.
    w_taps = jnp.transpose(w_oihw, (2, 3, 1, 0)).reshape(9, Cin, Cout)
    w_taps = w_taps.astype(jnp.bfloat16)

    flops = 2 * B * H * W * 9 * Cin * Cout
    bytes_accessed = x_pad.size * 2 + w_taps.size * 2 + B * Cout * 4

    # Phase 1: conv + ReLU + spatial max, gridded over batch (parallel axis).
    kernel = functools.partial(conv_relu_maxpool_kernel, H=H, W=W)
    pooled = pl.pallas_call(
        kernel,
        out_shape=jax.ShapeDtypeStruct((B, 1, Cout), jnp.float32),
        grid=(B,),
        in_specs=[
            # One padded image per step; batch dim squeezed out of the ref.
            pl.BlockSpec((None, H + 2, W + 2, Cin), lambda b: (b, 0, 0, 0)),
            # Constant index map: weights stay VMEM-resident, no re-DMA.
            pl.BlockSpec((9, Cin, Cout), lambda b: (0, 0, 0)),
        ],
        out_specs=pl.BlockSpec((1, 1, Cout), lambda b: (b, 0, 0)),
        compiler_params=pltpu.CompilerParams(
            dimension_semantics=("parallel",)),
        cost_estimate=pl.CostEstimate(
            flops=flops, transcendentals=0, bytes_accessed=bytes_accessed),
    )(x_pad, w_taps)

    # Phase 2: BatchNorm over the tiny (B, Cout) pooled tensor (single call).
    out = pl.pallas_call(
        batchnorm1d_kernel,
        out_shape=jax.ShapeDtypeStruct((B, Cout), jnp.float32),
        in_specs=[pl.BlockSpec(memory_space=pltpu.MemorySpace.VMEM)] * 3,
        out_specs=pl.BlockSpec(memory_space=pltpu.MemorySpace.VMEM),
    )(pooled.reshape(B, Cout), gamma, beta)
    return out


if __name__ == "__main__":
    key = jax.random.PRNGKey(0)
    k1, k2 = jax.random.split(key)

    # Small shapes consistent with the module (in_chans -> feature_dim, 3x3).
    B, Cin, H, W = 2, 16, 8, 8
    Cout = 32  # feature_dim

    x_nchw = jax.random.normal(k1, (B, Cin, H, W), dtype=jnp.float32)
    # Deterministic synthetic conv weight (PyTorch OIHW layout, bias=False).
    w_oihw = jax.random.normal(k2, (Cout, Cin, 3, 3), dtype=jnp.float32) * 0.05
    # Fresh BatchNorm1d affine params.
    gamma = jnp.ones((1, Cout), dtype=jnp.float32)
    beta = jnp.zeros((1, Cout), dtype=jnp.float32)

    out = jax.block_until_ready(
        feature_attention_net(x_nchw, w_oihw, gamma, beta))

    # Pure-JAX reference with the same bf16 MXU operands / f32 accumulation.
    conv = jax.lax.conv_general_dilated(
        x_nchw.astype(jnp.bfloat16), w_oihw.astype(jnp.bfloat16),
        window_strides=(1, 1), padding="SAME",
        dimension_numbers=("NCHW", "OIHW", "NCHW"),
        preferred_element_type=jnp.float32)
    act = jnp.maximum(conv, 0.0)
    pooled_ref = jnp.max(act, axis=(2, 3))
    mean = jnp.mean(pooled_ref, axis=0, keepdims=True)
    var = jnp.mean((pooled_ref - mean) ** 2, axis=0, keepdims=True)
    ref = (pooled_ref - mean) / jnp.sqrt(var + 2e-5) * gamma + beta

    assert out.shape == (B, Cout)
    assert jnp.allclose(out, ref, atol=1e-2, rtol=1e-2), "mismatch vs reference"
    print("KERNEL_OK")
</pallas_src>

<mosaic_0001>
module attributes {stable_mosaic.version = 11 : i64} {
  func.func @conv_relu_maxpool_kernel(%arg0: i32, %arg1: memref<1x10x10x16xbf16, #tpu.memory_space<vmem>>, %arg2: memref<9x16x32xbf16, #tpu.memory_space<vmem>>, %arg3: memref<1x1x32xf32, #tpu.memory_space<vmem>>) attributes {dimension_semantics = [#tpu.dimension_semantics<parallel>], iteration_bounds = array<i64: 2>, scalar_prefetch = 0 : i64, scratch_operands = 0 : i64, tpu.core_type = #tpu.core_type<tc>, window_params = [{transform_indices = @transform_0, window_bounds = array<i64: 1, 10, 10, 16>}, {pipeline_mode = #tpu.pipeline_mode<synchronous>, transform_indices = @transform_1, window_bounds = array<i64: 9, 16, 32>}, {transform_indices = @transform_2, window_bounds = array<i64: 1, 1, 32>}]} {
    %cst = arith.constant 0.000000e+00 : f32
    %0 = vector.broadcast %cst : f32 to vector<64x32xf32>
    %c0 = arith.constant 0 : index
    %c0_0 = arith.constant 0 : index
    %c0_1 = arith.constant 0 : index
    %c0_2 = arith.constant 0 : index
    %1 = vector.load %arg1[%c0, %c0_0, %c0_1, %c0_2] : memref<1x10x10x16xbf16, #tpu.memory_space<vmem>>, vector<1x8x8x16xbf16>
    %2 = vector.shape_cast %1 : vector<1x8x8x16xbf16> to vector<8x8x16xbf16>
    %3 = vector.shape_cast %2 : vector<8x8x16xbf16> to vector<64x16xbf16>
    %c0_3 = arith.constant 0 : index
    %c0_4 = arith.constant 0 : index
    %c0_5 = arith.constant 0 : index
    %4 = vector.load %arg2[%c0_3, %c0_4, %c0_5] : memref<9x16x32xbf16, #tpu.memory_space<vmem>>, vector<1x16x32xbf16>
    %5 = vector.shape_cast %4 : vector<1x16x32xbf16> to vector<16x32xbf16>
    %cst_6 = arith.constant dense<0.000000e+00> : vector<64x32xf32>
    %6 = tpu.matmul %3, %5, %cst_6 {dimension_numbers = #tpu.dot_dimension_numbers<[1], [0], [0], [1], [0, 0, 1, 1], [], []>} : vector<64x16xbf16>, vector<16x32xbf16>, vector<64x32xf32> -> vector<64x32xf32>
    %7 = arith.addf %0, %6 : vector<64x32xf32>
    %c0_7 = arith.constant 0 : index
    %c0_8 = arith.constant 0 : index
    %c1 = arith.constant 1 : index
    %c0_9 = arith.constant 0 : index
    %8 = vector.load %arg1[%c0_7, %c0_8, %c1, %c0_9] : memref<1x10x10x16xbf16, #tpu.memory_space<vmem>>, vector<1x8x8x16xbf16>
    %9 = vector.shape_cast %8 : vector<1x8x8x16xbf16> to vector<8x8x16xbf16>
    %10 = vector.shape_cast %9 : vector<8x8x16xbf16> to vector<64x16xbf16>
    %c1_10 = arith.constant 1 : index
    %c0_11 = arith.constant 0 : index
    %c0_12 = arith.constant 0 : index
    %11 = vector.load %arg2[%c1_10, %c0_11, %c0_12] : memref<9x16x32xbf16, #tpu.memory_space<vmem>>, vector<1x16x32xbf16>
    %12 = vector.shape_cast %11 : vector<1x16x32xbf16> to vector<16x32xbf16>
    %cst_13 = arith.constant dense<0.000000e+00> : vector<64x32xf32>
    %13 = tpu.matmul %10, %12, %cst_13 {dimension_numbers = #tpu.dot_dimension_numbers<[1], [0], [0], [1], [0, 0, 1, 1], [], []>} : vector<64x16xbf16>, vector<16x32xbf16>, vector<64x32xf32> -> vector<64x32xf32>
    %14 = arith.addf %7, %13 : vector<64x32xf32>
    %c0_14 = arith.constant 0 : index
    %c0_15 = arith.constant 0 : index
    %c2 = arith.constant 2 : index
    %c0_16 = arith.constant 0 : index
    %15 = vector.load %arg1[%c0_14, %c0_15, %c2, %c0_16] : memref<1x10x10x16xbf16, #tpu.memory_space<vmem>>, vector<1x8x8x16xbf16>
    %16 = vector.shape_cast %15 : vector<1x8x8x16xbf16> to vector<8x8x16xbf16>
    %17 = vector.shape_cast %16 : vector<8x8x16xbf16> to vector<64x16xbf16>
    %c2_17 = arith.constant 2 : index
    %c0_18 = arith.constant 0 : index
    %c0_19 = arith.constant 0 : index
    %18 = vector.load %arg2[%c2_17, %c0_18, %c0_19] : memref<9x16x32xbf16, #tpu.memory_space<vmem>>, vector<1x16x32xbf16>
    %19 = vector.shape_cast %18 : vector<1x16x32xbf16> to vector<16x32xbf16>
    %cst_20 = arith.constant dense<0.000000e+00> : vector<64x32xf32>
    %20 = tpu.matmul %17, %19, %cst_20 {dimension_numbers = #tpu.dot_dimension_numbers<[1], [0], [0], [1], [0, 0, 1, 1], [], []>} : vector<64x16xbf16>, vector<16x32xbf16>, vector<64x32xf32> -> vector<64x32xf32>
    %21 = arith.addf %14, %20 : vector<64x32xf32>
    %c0_21 = arith.constant 0 : index
    %c1_22 = arith.constant 1 : index
    %c0_23 = arith.constant 0 : index
    %c0_24 = arith.constant 0 : index
    %22 = vector.load %arg1[%c0_21, %c1_22, %c0_23, %c0_24] : memref<1x10x10x16xbf16, #tpu.memory_space<vmem>>, vector<1x8x8x16xbf16>
    %23 = vector.shape_cast %22 : vector<1x8x8x16xbf16> to vector<8x8x16xbf16>
    %24 = vector.shape_cast %23 : vector<8x8x16xbf16> to vector<64x16xbf16>
    %c3 = arith.constant 3 : index
    %c0_25 = arith.constant 0 : index
    %c0_26 = arith.constant 0 : index
    %25 = vector.load %arg2[%c3, %c0_25, %c0_26] : memref<9x16x32xbf16, #tpu.memory_space<vmem>>, vector<1x16x32xbf16>
    %26 = vector.shape_cast %25 : vector<1x16x32xbf16> to vector<16x32xbf16>
    %cst_27 = arith.constant dense<0.000000e+00> : vector<64x32xf32>
    %27 = tpu.matmul %24, %26, %cst_27 {dimension_numbers = #tpu.dot_dimension_numbers<[1], [0], [0], [1], [0, 0, 1, 1], [], []>} : vector<64x16xbf16>, vector<16x32xbf16>, vector<64x32xf32> -> vector<64x32xf32>
    %28 = arith.addf %21, %27 : vector<64x32xf32>
    %c0_28 = arith.constant 0 : index
    %c1_29 = arith.constant 1 : index
    %c1_30 = arith.constant 1 : index
    %c0_31 = arith.constant 0 : index
    %29 = vector.load %arg1[%c0_28, %c1_29, %c1_30, %c0_31] : memref<1x10x10x16xbf16, #tpu.memory_space<vmem>>, vector<1x8x8x16xbf16>
    %30 = vector.shape_cast %29 : vector<1x8x8x16xbf16> to vector<8x8x16xbf16>
    %31 = vector.shape_cast %30 : vector<8x8x16xbf16> to vector<64x16xbf16>
    %c4 = arith.constant 4 : index
    %c0_32 = arith.constant 0 : index
    %c0_33 = arith.constant 0 : index
    %32 = vector.load %arg2[%c4, %c0_32, %c0_33] : memref<9x16x32xbf16, #tpu.memory_space<vmem>>, vector<1x16x32xbf16>
    %33 = vector.shape_cast %32 : vector<1x16x32xbf16> to vector<16x32xbf16>
    %cst_34 = arith.constant dense<0.000000e+00> : vector<64x32xf32>
    %34 = tpu.matmul %31, %33, %cst_34 {dimension_numbers = #tpu.dot_dimension_numbers<[1], [0], [0], [1], [0, 0, 1, 1], [], []>} : vector<64x16xbf16>, vector<16x32xbf16>, vector<64x32xf32> -> vector<64x32xf32>
    %35 = arith.addf %28, %34 : vector<64x32xf32>
    %c0_35 = arith.constant 0 : index
    %c1_36 = arith.constant 1 : index
    %c2_37 = arith.constant 2 : index
    %c0_38 = arith.constant 0 : index
    %36 = vector.load %arg1[%c0_35, %c1_36, %c2_37, %c0_38] : memref<1x10x10x16xbf16, #tpu.memory_space<vmem>>, vector<1x8x8x16xbf16>
    %37 = vector.shape_cast %36 : vector<1x8x8x16xbf16> to vector<8x8x16xbf16>
    %38 = vector.shape_cast %37 : vector<8x8x16xbf16> to vector<64x16xbf16>
    %c5 = arith.constant 5 : index
    %c0_39 = arith.constant 0 : index
    %c0_40 = arith.constant 0 : index
    %39 = vector.load %arg2[%c5, %c0_39, %c0_40] : memref<9x16x32xbf16, #tpu.memory_space<vmem>>, vector<1x16x32xbf16>
    %40 = vector.shape_cast %39 : vector<1x16x32xbf16> to vector<16x32xbf16>
    %cst_41 = arith.constant dense<0.000000e+00> : vector<64x32xf32>
    %41 = tpu.matmul %38, %40, %cst_41 {dimension_numbers = #tpu.dot_dimension_numbers<[1], [0], [0], [1], [0, 0, 1, 1], [], []>} : vector<64x16xbf16>, vector<16x32xbf16>, vector<64x32xf32> -> vector<64x32xf32>
    %42 = arith.addf %35, %41 : vector<64x32xf32>
    %c0_42 = arith.constant 0 : index
    %c2_43 = arith.constant 2 : index
    %c0_44 = arith.constant 0 : index
    %c0_45 = arith.constant 0 : index
    %43 = vector.load %arg1[%c0_42, %c2_43, %c0_44, %c0_45] : memref<1x10x10x16xbf16, #tpu.memory_space<vmem>>, vector<1x8x8x16xbf16>
    %44 = vector.shape_cast %43 : vector<1x8x8x16xbf16> to vector<8x8x16xbf16>
    %45 = vector.shape_cast %44 : vector<8x8x16xbf16> to vector<64x16xbf16>
    %c6 = arith.constant 6 : index
    %c0_46 = arith.constant 0 : index
    %c0_47 = arith.constant 0 : index
    %46 = vector.load %arg2[%c6, %c0_46, %c0_47] : memref<9x16x32xbf16, #tpu.memory_space<vmem>>, vector<1x16x32xbf16>
    %47 = vector.shape_cast %46 : vector<1x16x32xbf16> to vector<16x32xbf16>
    %cst_48 = arith.constant dense<0.000000e+00> : vector<64x32xf32>
    %48 = tpu.matmul %45, %47, %cst_48 {dimension_numbers = #tpu.dot_dimension_numbers<[1], [0], [0], [1], [0, 0, 1, 1], [], []>} : vector<64x16xbf16>, vector<16x32xbf16>, vector<64x32xf32> -> vector<64x32xf32>
    %49 = arith.addf %42, %48 : vector<64x32xf32>
    %c0_49 = arith.constant 0 : index
    %c2_50 = arith.constant 2 : index
    %c1_51 = arith.constant 1 : index
    %c0_52 = arith.constant 0 : index
    %50 = vector.load %arg1[%c0_49, %c2_50, %c1_51, %c0_52] : memref<1x10x10x16xbf16, #tpu.memory_space<vmem>>, vector<1x8x8x16xbf16>
    %51 = vector.shape_cast %50 : vector<1x8x8x16xbf16> to vector<8x8x16xbf16>
    %52 = vector.shape_cast %51 : vector<8x8x16xbf16> to vector<64x16xbf16>
    %c7 = arith.constant 7 : index
    %c0_53 = arith.constant 0 : index
    %c0_54 = arith.constant 0 : index
    %53 = vector.load %arg2[%c7, %c0_53, %c0_54] : memref<9x16x32xbf16, #tpu.memory_space<vmem>>, vector<1x16x32xbf16>
    %54 = vector.shape_cast %53 : vector<1x16x32xbf16> to vector<16x32xbf16>
    %cst_55 = arith.constant dense<0.000000e+00> : vector<64x32xf32>
    %55 = tpu.matmul %52, %54, %cst_55 {dimension_numbers = #tpu.dot_dimension_numbers<[1], [0], [0], [1], [0, 0, 1, 1], [], []>} : vector<64x16xbf16>, vector<16x32xbf16>, vector<64x32xf32> -> vector<64x32xf32>
    %56 = arith.addf %49, %55 : vector<64x32xf32>
    %c0_56 = arith.constant 0 : index
    %c2_57 = arith.constant 2 : index
    %c2_58 = arith.constant 2 : index
    %c0_59 = arith.constant 0 : index
    %57 = vector.load %arg1[%c0_56, %c2_57, %c2_58, %c0_59] : memref<1x10x10x16xbf16, #tpu.memory_space<vmem>>, vector<1x8x8x16xbf16>
    %58 = vector.shape_cast %57 : vector<1x8x8x16xbf16> to vector<8x8x16xbf16>
    %59 = vector.shape_cast %58 : vector<8x8x16xbf16> to vector<64x16xbf16>
    %c8 = arith.constant 8 : index
    %c0_60 = arith.constant 0 : index
    %c0_61 = arith.constant 0 : index
    %60 = vector.load %arg2[%c8, %c0_60, %c0_61] : memref<9x16x32xbf16, #tpu.memory_space<vmem>>, vector<1x16x32xbf16>
    %61 = vector.shape_cast %60 : vector<1x16x32xbf16> to vector<16x32xbf16>
    %cst_62 = arith.constant dense<0.000000e+00> : vector<64x32xf32>
    %62 = tpu.matmul %59, %61, %cst_62 {dimension_numbers = #tpu.dot_dimension_numbers<[1], [0], [0], [1], [0, 0, 1, 1], [], []>} : vector<64x16xbf16>, vector<16x32xbf16>, vector<64x32xf32> -> vector<64x32xf32>
    %63 = arith.addf %56, %62 : vector<64x32xf32>
    %cst_63 = arith.constant 0.000000e+00 : f32
    %64 = vector.broadcast %cst_63 : f32 to vector<64x32xf32>
    %65 = arith.maximumf %63, %64 : vector<64x32xf32>
    %cst_64 = arith.constant dense<0xFF800000> : vector<32xf32>
    %66 = vector.multi_reduction <maximumf>, %65, %cst_64 [0] : vector<64x32xf32> to vector<32xf32>
    %67 = vector.shape_cast %66 : vector<32xf32> to vector<1x1x32xf32>
    %c0_65 = arith.constant 0 : index
    %c0_66 = arith.constant 0 : index
    %c0_67 = arith.constant 0 : index
    %68 = vector.load %arg3[%c0_65, %c0_66, %c0_67] : memref<1x1x32xf32, #tpu.memory_space<vmem>>, vector<1x1x32xf32>
    tpu.vector_store %arg3[%c0_65, %c0_66, %c0_67], %67 {strides = array<i32>} : memref<1x1x32xf32, #tpu.memory_space<vmem>>, vector<1x1x32xf32>,
    return
  }
  func.func @transform_0(%arg0: i32) -> (i32, i32, i32, i32) {
    %c0_i32 = arith.constant 0 : i32
    %c0_i32_0 = arith.constant 0 : i32
    %c0_i32_1 = arith.constant 0 : i32
    %c0_i32_2 = arith.constant 0 : i32
    return %arg0, %c0_i32, %c0_i32_0, %c0_i32_1 : i32, i32, i32, i32
  }
  func.func @transform_1(%arg0: i32) -> (i32, i32, i32) {
    %c0_i32 = arith.constant 0 : i32
    %c0_i32_0 = arith.constant 0 : i32
    %c0_i32_1 = arith.constant 0 : i32
    %c0_i32_2 = arith.constant 0 : i32
    return %c0_i32, %c0_i32_0, %c0_i32_1 : i32, i32, i32
  }
  func.func @transform_2(%arg0: i32) -> (i32, i32, i32) {
    %c0_i32 = arith.constant 0 : i32
    %c0_i32_0 = arith.constant 0 : i32
    %c0_i32_1 = arith.constant 0 : i32
    return %arg0, %c0_i32, %c0_i32_0 : i32, i32, i32
  }
}

module attributes {stable_mosaic.version = 11 : i64} {
  func.func @batchnorm1d_kernel(%arg0: memref<2x32xf32, #tpu.memory_space<vmem>>, %arg1: memref<1x32xf32, #tpu.memory_space<vmem>>, %arg2: memref<1x32xf32, #tpu.memory_space<vmem>>, %arg3: memref<2x32xf32, #tpu.memory_space<vmem>>) attributes {dimension_semantics = [], scalar_prefetch = 0 : i64, scratch_operands = 0 : i64, tpu.core_type = #tpu.core_type<tc>} {
    %c0 = arith.constant 0 : index
    %c0_0 = arith.constant 0 : index
    %0 = vector.load %arg0[%c0, %c0_0] : memref<2x32xf32, #tpu.memory_space<vmem>>, vector<2x32xf32>
    %cst = arith.constant dense<0.000000e+00> : vector<32xf32>
    %1 = vector.multi_reduction <add>, %0, %cst [0] : vector<2x32xf32> to vector<32xf32>
    %2 = vector.shape_cast %1 : vector<32xf32> to vector<1x32xf32>
    %cst_1 = arith.constant 2.000000e+00 : f32
    %3 = vector.broadcast %cst_1 : f32 to vector<1x32xf32>
    %4 = arith.divf %2, %3 : vector<1x32xf32>
    %5 = vector.broadcast %4 : vector<1x32xf32> to vector<2x32xf32>
    %6 = arith.subf %0, %5 : vector<2x32xf32>
    %7 = arith.mulf %6, %6 : vector<2x32xf32>
    %cst_2 = arith.constant dense<0.000000e+00> : vector<32xf32>
    %8 = vector.multi_reduction <add>, %7, %cst_2 [0] : vector<2x32xf32> to vector<32xf32>
    %9 = vector.shape_cast %8 : vector<32xf32> to vector<1x32xf32>
    %cst_3 = arith.constant 2.000000e+00 : f32
    %10 = vector.broadcast %cst_3 : f32 to vector<1x32xf32>
    %11 = arith.divf %9, %10 : vector<1x32xf32>
    %cst_4 = arith.constant 2.000000e-05 : f32
    %12 = vector.broadcast %cst_4 : f32 to vector<1x32xf32>
    %13 = arith.addf %11, %12 : vector<1x32xf32>
    %14 = math.rsqrt %13 : vector<1x32xf32>
    %15 = vector.broadcast %4 : vector<1x32xf32> to vector<2x32xf32>
    %16 = arith.subf %0, %15 : vector<2x32xf32>
    %17 = vector.broadcast %14 : vector<1x32xf32> to vector<2x32xf32>
    %18 = arith.mulf %16, %17 : vector<2x32xf32>
    %c0_5 = arith.constant 0 : index
    %c0_6 = arith.constant 0 : index
    %19 = vector.load %arg1[%c0_5, %c0_6] : memref<1x32xf32, #tpu.memory_space<vmem>>, vector<1x32xf32>
    %20 = vector.broadcast %19 : vector<1x32xf32> to vector<2x32xf32>
    %21 = arith.mulf %18, %20 : vector<2x32xf32>
    %c0_7 = arith.constant 0 : index
    %c0_8 = arith.constant 0 : index
    %22 = vector.load %arg2[%c0_7, %c0_8] : memref<1x32xf32, #tpu.memory_space<vmem>>, vector<1x32xf32>
    %23 = vector.broadcast %22 : vector<1x32xf32> to vector<2x32xf32>
    %24 = arith.addf %21, %23 : vector<2x32xf32>
    %c0_9 = arith.constant 0 : index
    %c0_10 = arith.constant 0 : index
    %25 = vector.load %arg3[%c0_9, %c0_10] : memref<2x32xf32, #tpu.memory_space<vmem>>, vector<2x32xf32>
    tpu.vector_store %arg3[%c0_9, %c0_10], %24 {strides = array<i32>} : memref<2x32xf32, #tpu.memory_space<vmem>>, vector<2x32xf32>,
    return
  }
}

</mosaic_0001>

<bundles_post_ra>
// kernel: feature_attention_net.3
= control target key start
LH: loop header
LB: loop body
LE: loop exit
PB: predicated region body
PF: predicated region fallthrough
CT: control target
= control target key end

     0   :  { %vm16_vm0 = vcmask 254976   ;;  %s144_s0 = inlined_call_operand.vmem [shape: f32[2,32], index: 0, kind: input, shape index: {}]   ;;  %s145_s1 = inlined_call_operand.vmem [shape: f32[1,32], index: 1, kind: input, shape index: {}]   ;;  %s146_s2 = inlined_call_operand.vmem [shape: f32[1,32], index: 2, kind: input, shape index: {}]   ;;  %s147_s3 = inlined_call_operand.hbm [shape: f32[2,32], index: 3, kind: output, shape index: {}]  }
   0x1   :  { %v15_v0 = vld [vmem:[%s144_s0] sm:$0x3] }
   0x2   :  { %v17_v1 = vsel %vm16_vm0, %v15_v0, 0.0 }
   0x3   :  { %8 = vsyncpa [#allocation3], 0  ;;  %v18_v2 = vrot.slane %v17_v1, 4  ;;  %v70_v21 = vld [vmem:[%s145_s1] ss:$0 sm:$0xff]  ;;  %s99_s17 = smov [#allocation2]  }
   0x4   :  { %v71_v23 = vld [vmem:[%s146_s2] ss:$0 sm:$0xff]  ;;  %s62_s18 = sshll.u32 %s99_s17, 4  ;;  %s63_s18 = int_to_ptr.vmem [resolvable:$true] %s62_s18 }
   0x5   :  { %v19_v3 = vadd.f32 %v18_v2, %v17_v1  ;;  %s75_s19 = scalar_lea.vmem %s63_s18, 32  ;;  %p80_p1 = scmp.lt.s32.totalorder %s63_s18, %s63_s18 }
   0x6   :  { %p76_p0 = scmp.ne.s32.totalorder %s63_s18, %s75_s19  ;;  %p81_p2 = scmp.lt.s32.totalorder %s75_s19, %s75_s19 }
   0x7   :  { %v20_v4 = vrot.slane %v19_v3, 2 }
   0x8   :  { %p82_p3 = por %p81_p2, %p80_p1 }
   0x9   :  { %v21_v5 = vadd.f32 %v20_v4, %v19_v3 }
   0xa   :  { %p83_p4 = pnand %p82_p3, %p76_p0 }
   0xb   :  { %v22_v6 = vrot.slane %v21_v5, 1 }
   0xd   :  { %v23_v7 = vadd.f32 %v22_v6, %v21_v5 }
   0xf   :  { %v25_v8 = vmul.f32 0.5, %v23_v7 }
  0x11   :  { %v26_v9 = vsub.f32 %v15_v0, %v25_v8 }
  0x13   :  { %v27_v10 = vmul.f32 %v26_v9, %v26_v9 }
  0x15   :  { %v28_v11 = vsel %vm16_vm0, %v27_v10, 0.0 }
  0x16   :  { %v29_v12 = vrot.slane %v28_v11, 4 }
  0x18   :  { %v30_v13 = vadd.f32 %v29_v12, %v28_v11 }
  0x1a   :  { %v31_v14 = vrot.slane %v30_v13, 2 }
  0x1c   :  { %v32_v15 = vadd.f32 %v31_v14, %v30_v13 }
  0x1e   :  { %v33_v16 = vrot.slane %v32_v15, 1 }
  0x20   :  { %v34_v17 = vadd.f32 %v33_v16, %v32_v15 }
  0x22   :  { %v35_v18 = vmul.f32 0.5, %v34_v17 }
  0x24   :  { %v36_v19 = vadd.f32 2e-05, %v35_v18 }
  0x26   :  { %73 = vrsqrt.f32 %v36_v19 }
  0x30   :  { %v74_v20 = vpop.eup %73 }
  0x31   :  { %v38_v22 = vmul.f32 %v74_v20, %v26_v9 }
  0x33   :  { %v46_v24 = vmul.f32 %v70_v21, %v38_v22 }
  0x35   :  { %v54_v25 = vadd.f32 %v71_v23, %v46_v24 }
  0x37   :  { %55 = vst.msk [vmem:[#allocation2] sm:$0x3] %vm16_vm0, %v54_v25 }
  0x38   :  { %86 = shalt.err (!%p83_p4)
}
  0x39   :  { %s87_s21 = scalar_lea.hbm %s147_s3, 32 }
  0x3a   :  { %p88_p5 = scmp.ne.s32.totalorder %s147_s3, %s87_s21  ;;  %p91_p6 = scmp.lt.u32.totalorder %s87_s21, %s147_s3 }
  0x3c   :  { %p93_p7 = pnand %p91_p6, %p88_p5 }
  0x3e   :  { %96 = shalt.err (!%p93_p7)
}
  0x3f   :  { %65 = dma.vmem_to_hbm [thread:$0]  %s63_s18, 32, %s147_s3, [#allocation3]  }
  0x40   :  { %97 = dma.done.wait [#allocation3], 32  }
  0x41   :  { %98 = vsyncadd [#allocation3], 4294967264 }
  0x42   :  { %69 = vsyncpa [#allocation3], 1 }

// kernel: feature_attention_net.2
= control target key start
LH: loop header
LB: loop body
LE: loop exit
PB: predicated region body
PF: predicated region fallthrough
CT: control target
= control target key end

     0   :  { %s2205_s9 = smov 0   ;;  %s2701_s0 = inlined_call_operand.vmem [shape: bf16[2,10,10,16], index: 0, kind: input, shape index: {}]   ;;  %s2702_s1 = inlined_call_operand.vmem [shape: bf16[9,16,32], index: 1, kind: input, shape index: {}]   ;;  %s2703_s2 = inlined_call_operand.vmem [shape: f32[2,1,32], index: 2, kind: output, shape index: {}]  }
   0x1 LB: > { %s1758_s10 = sadd.s32 4294967295, %s2188_s9   ;;  %p1762_p0 = scmp.ge.s32.totalorder %s2188_s9, 1  ;;  %s2188_s9 = sphi %s2205_s9, %s12_s9  }
   0x2   : > { %p112_p1 = scmp.lt.s32.totalorder %s2188_s9, 3 }
   0x4   : > { %p113_p2 = pnand %p1762_p0, %p112_p1 }
   0x5   : > { %v2161_v0 = vld [vmem:[%s2702_s1 + $0x8] sm:$0xff] (!%p113_p2)   ;;  %p132_p3 = scmp.lt.s32.totalorder (!%p113_p2), %s1758_s10, 1  ;;  %v2219_v1 = vld [vmem:[%s2702_s1 + $0x20] sm:$0xff] (!%p113_p2)   ;;  %vm159_vm0 = vsmask.f32 (!%p113_p2), 3328  ;;  %vm295_vm2 = vcmask (!%p113_p2), 130048  }
   0x6   : > { %116 = sbr.rel (%p113_p2) target bundleno = 354 (0x162), region = 28  ;;  %1996 = vmatprep.subr.bf16.mxu1 (!%p113_p2), %v2161_v0  ;;  %v2226_v2 = vld [vmem:[%s2702_s1] sm:$0xff] (!%p113_p2)   ;;  %2036 = vmatprep.subr.bf16.mxu0 (!%p113_p2), %v2219_v1  ;;  %v2235_v3 = vld [vmem:[%s2702_s1 + $0x28] sm:$0xff] (!%p113_p2)   ;;  %vm160_vm1 = vsmask.f32 (!%p113_p2), 7440  ;;  %vm500_vm4 = vcmask (!%p113_p2), 1042432  }
   0x7   : > { %1997 = vmatpush3.bf16.msra.mxu1 (!%p113_p2), %v2161_v0  ;;  %2037 = vmatpush3.bf16.msra.mxu0 (!%p113_p2), %v2219_v1  ;;  %vm2272_vm3 = vmor (!%p113_p2), %vm159_vm0, %vm160_vm1  ;;  %vm501_vm5 = vcmask (!%p113_p2), 1046532   ;;  %vm1687_vm7 = vcmask (!%p113_p2), 261120   ;;  %vm1709_vm8 = vcmask (!%p113_p2), 253952  }
   0x8   : > { %2006 = vmatprep.subr.bf16.mxu1 (!%p113_p2), %v2226_v2  ;;  %2046 = vmatprep.subr.bf16.mxu0 (!%p113_p2), %v2235_v3  ;;  %vm2382_vm6 = vmor (!%p113_p2), %vm500_vm4, %vm501_vm5 }
   0xd   : > { %s2709_s10 = smov (!%p132_p3, %s1758_s10), 1 }
   0xe   : > { %s2152_s17 = smul.u32 80, %s2709_s10  ;;  %s139_s7 = scalar_lea.vmem %s2703_s2, %s2709_s10 }
  0x10   : > { %s2240_s22 = scalar_lea.vmem %s2701_s0, %s2152_s17 }
  0x11   : > { %v2244_v4 = vld [vmem:[%s2240_s22] sm:$0xf]  ;;  %v2247_v5 = vld [vmem:[%s2240_s22 + $0x8] sm:$0xf]  ;;  %v2250_v6 = vld [vmem:[%s2240_s22 + $0x4] sm:$0x1] }
  0x12   : > { %v2253_v7 = vld [vmem:[%s2240_s22 + $0xc] sm:$0x1]  ;;  %v163_v8 = vshrl.u32 %v2244_v4, 16  ;;  %v166_v9 = vshll.u32 %v2244_v4, 16  ;;  %v172_v10 = vshll.u32 %v2250_v6, 16  ;;  %v177_v11 = vshrl.u32 %v2247_v5, 16 }
  0x13   : > { %v180_v12 = vshll.u32 %v2247_v5, 16  ;;  %v186_v13 = vshll.u32 %v2253_v7, 16  ;;  %v1822_v14 = vld [vmem:[%s2240_s22 + $0x8] sm:$0xf]  ;;  %v2263_v19 = vld [vmem:[%s2240_s22 + $0xc] sm:$0x1] }
  0x14   : > { %v165_v15 = vrot.slane %v163_v8, 4  ;;  %v168_v16 = vrot.slane %v166_v9, 5  ;;  %v174_v17 = vrot.slane %v172_v10, 5  ;;  %v179_v18 = vrot.slane %v177_v11, 4  ;;  %v1824_v22 = vld [vmem:[%s2240_s22 + $0x10] sm:$0xf] }
  0x15   : > { %v182_v20 = vrot.slane %v180_v12, 5  ;;  %v188_v21 = vrot.slane %v186_v13, 5  ;;  %v2267_v23 = vld [vmem:[%s2240_s22 + $0x14] sm:$0x1]  ;;  %v781_v25 = vshrl.u32 %v1822_v14, 16  ;;  %v784_v26 = vshll.u32 %v1822_v14, 16 }
  0x16   : > { %v169_v24 = vor.u32 %v168_v16, %v165_v15  ;;  %v790_v27 = vshll.u32 %v2263_v19, 16  ;;  %v795_v30 = vshrl.u32 %v1824_v22, 16  ;;  %v798_v31 = vshll.u32 %v1824_v22, 16  ;;  %v2278_v33 = vld [vmem:[%s2240_s22 + $0x10] sm:$0xf] }
  0x17   : > { %v183_v29 = vor.u32 %v182_v20, %v179_v18  ;;  %v804_v32 = vshll.u32 %v2267_v23, 16  ;;  %v505_v35 = vrot.slane %v2250_v6, 5  ;;  %v783_v36 = vrot.slane %v781_v25, 4  ;;  %v2282_v38 = vld [vmem:[%s2240_s22 + $0x18] sm:$0xf] }
  0x18   : > { %v170_v34 = vrot.slane %v169_v24, 4  ;;  %v786_v37 = vrot.slane %v784_v26, 5  ;;  %v509_v40 = vrot.slane %v2253_v7, 5  ;;  %v797_v41 = vrot.slane %v795_v30, 4  ;;  %v2286_v43 = vld [vmem:[%s2240_s22 + $0x14] sm:$0x1] }
  0x19   : > { %v184_v39 = vrot.slane %v183_v29, 4  ;;  %v800_v42 = vrot.slane %v798_v31, 5  ;;  %v792_v46 = vrot.slane %v790_v27, 5  ;;  %v806_v47 = vrot.slane %v804_v32, 5  ;;  %v2293_v50 = vld [vmem:[%s2240_s22 + $0x1c] sm:$0x1] }
  0x1a   : > { %v175_v44 = vsel %vm2272_vm3, %v170_v34, %v174_v17  ;;  %v787_v45 = vor.u32 %v786_v37, %v783_v36  ;;  %v191_v51 = vshrl.u32 %v2278_v33, 16  ;;  %v194_v52 = vshll.u32 %v2278_v33, 16  ;;  %v1826_v61 = vld [vmem:[%s2240_s22 + $0x18] sm:$0xf]  ;;  %v2307_v9 = vld [vmem:[%s2240_s22 + $0x1c] sm:$0x1] }
  0x1b   : > { %v189_v48 = vsel %vm2272_vm3, %v184_v39, %v188_v21  ;;  %v801_v49 = vor.u32 %v800_v42, %v797_v41  ;;  %v200_v55 = vshll.u32 %v2286_v43, 16  ;;  %v205_v56 = vshrl.u32 %v2282_v38, 16  ;;  %v1828_v14 = vld [vmem:[%s2240_s22 + $0x20] sm:$0xf]  ;;  %v2313_v15 = vld [vmem:[%s2240_s22 + $0x24] sm:$0x1] }
  0x1c   : > { %v1766_v53 = vcombine.low %v175_v44, %v189_v48  ;;  %v788_v54 = vrot.slane %v787_v45, 4  ;;  %v193_v58 = vrot.slane %v191_v51, 4  ;;  %v196_v59 = vrot.slane %v194_v52, 5  ;;  %v2320_v31 = vld [vmem:[%s2240_s22 + $0x20] sm:$0xf] }
  0x1d   : > { %v802_v57 = vrot.slane %v801_v49, 4  ;;  %v208_v60 = vshll.u32 %v2282_v38, 16  ;;  %v1024_v63 = vrot.slane %v2263_v19, 5  ;;  %v207_v0 = vrot.slane %v205_v56, 4  ;;  %v2325_v39 = vld [vmem:[%s2240_s22 + $0x24] sm:$0x1] }
  0x1e   : > { %1998 = vmatprep.mubr.msk.bf16.mxu1 %vm295_vm2, %v1766_v53  ;;  %v793_v62 = vsel %vm2272_vm3, %v788_v54, %v792_v46  ;;  %v214_v8 = vshll.u32 %v2293_v50, 16  ;;  %v197_v11 = vor.u32 %v196_v59, %v193_v58  ;;  %v202_v12 = vrot.slane %v200_v55, 5  ;;  %v2329_v46 = vld [vmem:[%s2240_s22 + $0x28] sm:$0xf]  ;;  %v2335_v51 = vld [vmem:[%s2240_s22 + $0x2c] sm:$0x1] }
  0x1f   : > { %v807_v10 = vsel %vm2272_vm3, %v802_v57, %v806_v47  ;;  %v210_v13 = vrot.slane %v208_v60, 5  ;;  %v1028_v17 = vrot.slane %v2267_v23, 5  ;;  %v809_v20 = vshrl.u32 %v1826_v61, 16  ;;  %v2341_v57 = vld [vmem:[%s2240_s22 + $0x30] sm:$0xf] }
  0x20   : > { %v1840_v16 = vcombine.low %v793_v62, %v807_v10  ;;  %v216_v18 = vrot.slane %v214_v8, 5  ;;  %v198_v21 = vrot.slane %v197_v11, 4  ;;  %v812_v24 = vshll.u32 %v1826_v61, 16  ;;  %v2346_v58 = vld [vmem:[%s2702_s1 + $0x10] sm:$0xff]  }
  0x21   : > { %v211_v22 = vor.u32 %v210_v13, %v207_v0  ;;  %v818_v25 = vshll.u32 %v2307_v9, 16  ;;  %v811_v26 = vrot.slane %v809_v20, 4  ;;  %v823_v27 = vshrl.u32 %v1828_v14, 16  ;;  %v2351_v0 = vld [vmem:[%s2240_s22 + $0x38] sm:$0xf] }
  0x22   : > { %2038 = vmatprep.mubr.msk.bf16.mxu0 %vm295_vm2, %v1840_v16  ;;  %v826_v29 = vshll.u32 %v1828_v14, 16  ;;  %v832_v30 = vshll.u32 %v2313_v15, 16  ;;  %v203_v32 = vsel %vm2272_vm3, %v198_v21, %v202_v12  ;;  %v814_v36 = vrot.slane %v812_v24, 5  ;;  %v2356_v13 = vld [vmem:[%s2240_s22 + $0x34] sm:$0x1] }
  0x23   : > { %v212_v34 = vrot.slane %v211_v22, 4  ;;  %v820_v37 = vrot.slane %v818_v25, 5  ;;  %v825_v41 = vrot.slane %v823_v27, 4  ;;  %v1032_v45 = vrot.slane %v2307_v9, 5  ;;  %v2362_v20 = vld [vmem:[%s2240_s22 + $0x3c] sm:$0x1] }
  0x24   : > { %v828_v42 = vrot.slane %v826_v29, 5  ;;  %v834_v44 = vrot.slane %v832_v30, 5  ;;  %v815_v48 = vor.u32 %v814_v36, %v811_v26  ;;  %v1036_v49 = vrot.slane %v2313_v15, 5  ;;  %v2368_v22 = vld [vmem:[%s2702_s1 + $0x30] sm:$0xff]   ;;  %v1849_v27 = vld [vmem:[%s2240_s22 + $0x8] sm:$0xe] }
  0x25   : > { %v217_v47 = vsel %vm2272_vm3, %v212_v34, %v216_v18  ;;  %v219_v52 = vshrl.u32 %v2320_v31, 16  ;;  %v222_v55 = vshll.u32 %v2320_v31, 16  ;;  %v228_v56 = vshll.u32 %v2325_v39, 16  ;;  %v1850_v29 = vld [vmem:[%s2240_s22 + $0x10] sm:$0xe] }
  0x26   : > { %v1767_v53 = vcombine.low %v203_v32, %v217_v47  ;;  %v829_v54 = vor.u32 %v828_v42, %v825_v41  ;;  %v816_v59 = vrot.slane %v815_v48, 4  ;;  %v233_v61 = vshrl.u32 %v2329_v46, 16 }
  0x27   : > { %v221_v60 = vrot.slane %v219_v52, 4  ;;  %v236_v62 = vshll.u32 %v2329_v46, 16  ;;  %v224_v10 = vrot.slane %v222_v55, 5  ;;  %v230_v11 = vrot.slane %v228_v56, 5  ;;  %v1852_v52 = vld [vmem:[%s2240_s22 + $0x20] sm:$0xe] }
  0x28   : > { %1999 = vmatmul.mubr.msk.bf16.vlgmr.msra.gmra.mrb[0].mxu1 %vm295_vm2, %v1767_v53  ;;  %v830_v8 = vrot.slane %v829_v54, 4  ;;  %v242_v12 = vshll.u32 %v2335_v51, 16  ;;  %v821_v14 = vsel %vm2272_vm3, %v816_v59, %v820_v37  ;;  %v235_v16 = vrot.slane %v233_v61, 4  ;;  %v1851_v37 = vld [vmem:[%s2240_s22 + $0x18] sm:$0xe] }
  0x29   : > { %2007 = vmatpush3.bf16.msra.mxu1 %v2226_v2  ;;  %v238_v18 = vrot.slane %v236_v62, 5  ;;  %v247_v21 = vshrl.u32 %v2341_v57, 16  ;;  %v225_v25 = vor.u32 %v224_v10, %v221_v60  ;;  %v250_v26 = vshll.u32 %v2341_v57, 16  ;;  %v1853_v59 = vld [vmem:[%s2240_s22 + $0x28] sm:$0xe] }
  0x2a   : > { %v835_v24 = vsel %vm2272_vm3, %v830_v8, %v834_v44  ;;  %v244_v2 = vrot.slane %v242_v12, 5  ;;  %2016 = vmatprep.subr.bf16.mxu1 %v2346_v58  ;;  %v256_v36 = vshll.u32 %v2356_v13, 16  ;;  %v261_v44 = vshrl.u32 %v2351_v0, 16  ;;  %v2394_v10 = vld [vmem:[%s2240_s22 + $0x2c] sm:$0x1] }
  0x2b   : > { %v1841_v30 = vcombine.low %v821_v14, %v835_v24  ;;  %v239_v32 = vor.u32 %v238_v18, %v235_v16  ;;  %v249_v34 = vrot.slane %v247_v21, 4  ;;  %v226_v41 = vrot.slane %v225_v25, 4  ;;  %v2404_v25 = vld [vmem:[%s2240_s22 + $0x34] sm:$0x1] }
  0x2c   : > { %v252_v42 = vrot.slane %v250_v26, 5  ;;  %v264_v47 = vshll.u32 %v2351_v0, 16  ;;  %v258_v54 = vrot.slane %v256_v36, 5  ;;  %v270_v55 = vshll.u32 %v2362_v20, 16  ;;  %v1854_v26 = vld [vmem:[%s2240_s22 + $0x30] sm:$0xe] }
  0x2d   : > { %2039 = vmatmul.mubr.msk.bf16.vlgmr.msra.gmra.mrb[0].mxu0 %vm295_vm2, %v1841_v30  ;;  %v240_v53 = vrot.slane %v239_v32, 4  ;;  %v1857_v56 = vrot.slane %v1849_v27, 9  ;;  %v231_v60 = vsel %vm2272_vm3, %v226_v41, %v230_v11  ;;  %v263_v62 = vrot.slane %v261_v44, 4  ;;  %v2412_v27 = vld [vmem:[%s2240_s22 + $0x3c] sm:$0x1] }
  0x2e   : > { %2047 = vmatpush3.bf16.msra.mxu0 %v2235_v3  ;;  %v253_v61 = vor.u32 %v252_v42, %v249_v34  ;;  %v266_v8 = vrot.slane %v264_v47, 5  ;;  %v272_v14 = vrot.slane %v270_v55, 5  ;;  %v1858_v3 = vrot.slane %v1850_v29, 9  ;;  %v2422_v34 = vld [vmem:[%s2240_s22 + $0x44] sm:$0x1] }
  0x2f   : > { %v245_v12 = vsel %vm2272_vm3, %v240_v53, %v244_v2  ;;  %v1025_v16 = vsel %vm2382_vm6, %v1857_v56, %v1024_v63  ;;  %2056 = vmatprep.subr.bf16.mxu0 %v2368_v22  ;;  %v1859_v24 = vrot.slane %v1851_v37, 9  ;;  %v1860_v2 = vrot.slane %v1852_v52, 9  ;;  %v1856_v44 = vld [vmem:[%s2240_s22 + $0x40] sm:$0xe]  ;;  %v477_v55 = vld [vmem:[%s2240_s22 + $0x8] sm:$0xe] }
  0x30   : > { %v1768_v11 = vcombine.low %v231_v60, %v245_v12  ;;  %v254_v18 = vrot.slane %v253_v61, 4  ;;  %v267_v21 = vor.u32 %v266_v8, %v263_v62  ;;  %v1029_v19 = vsel %vm2382_vm6, %v1858_v3, %v1028_v17  ;;  %v1855_v17 = vld [vmem:[%s2240_s22 + $0x38] sm:$0xe]  ;;  %v476_v47 = vld [vmem:[%s2240_s22] sm:$0xe] }
  0x31   : > { %v1861_v63 = vrot.slane %v1853_v59, 9  ;;  %v1867_v32 = vcombine.low %v1025_v16, %v1029_v19  ;;  %v1033_v23 = vsel %vm2382_vm6, %v1859_v24, %v1032_v45  ;;  %v1037_v36 = vsel %vm2382_vm6, %v1860_v2, %v1036_v49  ;;  %v2447_v60 = vld [vmem:[%s2702_s1 + $0x38] sm:$0xff]   ;;  %v480_v8 = vld [vmem:[%s2240_s22 + $0x20] sm:$0xe]  ;;  %v481_v3 = vld [vmem:[%s2240_s22 + $0x28] sm:$0xe] }
  0x32   : > { %2002 = vmatprep.mubr.msk.bf16.mxu1 %vm295_vm2, %v1768_v11  ;;  %v259_v29 = vsel %vm2272_vm3, %v254_v18, %v258_v54  ;;  %v268_v30 = vrot.slane %v267_v21, 4  ;;  %v1040_v37 = vrot.slane %v2394_v10, 5  ;;  %v1862_v41 = vrot.slane %v1854_v26, 9  ;;  %v479_v62 = vld [vmem:[%s2240_s22 + $0x18] sm:$0xe] }
  0x33   : > { %v1044_v42 = vrot.slane %v2404_v25, 5  ;;  %2048 = vmatprep.mubr.msk.bf16.mxu0 %vm295_vm2, %v1867_v32  ;;  %v1868_v45 = vcombine.low %v1033_v23, %v1037_v36  ;;  %v1775_v15 = vcombine.low %v2244_v4, %v2247_v5  ;;  %v1863_v54 = vrot.slane %v1855_v17, 9  ;;  %v478_v4 = vld [vmem:[%s2240_s22 + $0x10] sm:$0xe]  ;;  %v2497_v32 = vld [vmem:[%s2240_s22 + $0x38] sm:$0xe] }
  0x34   : > { %v273_v9 = vsel %vm2272_vm3, %v268_v30, %v272_v14  ;;  %v1041_v52 = vsel %vm2382_vm6, %v1861_v63, %v1040_v37  ;;  %v1048_v59 = vrot.slane %v2412_v27, 5  ;;  %v1864_v5 = vrot.slane %v1856_v44, 9  ;;  %v1897_v63 = vld [vmem:[%s2240_s22 + $0x18] sm:$0xf]  ;;  %v2500_v23 = vld [vmem:[%s2240_s22 + $0x14] sm:$0x1] }
  0x35   : > { %v1769_v49 = vcombine.low %v259_v29, %v273_v9  ;;  %v1045_v53 = vsel %vm2382_vm6, %v1862_v41, %v1044_v42  ;;  %v1052_v61 = vrot.slane %v2422_v34, 5  ;;  %v513_v12 = vrot.slane %v2286_v43, 5  ;;  %v2509_v36 = vld [vmem:[%s2240_s22 + $0x1c] sm:$0x1]  ;;  %v1899_v42 = vld [vmem:[%s2240_s22 + $0x20] sm:$0xf] }
  0x36   : > { %v1869_v56 = vcombine.low %v1041_v52, %v1045_v53  ;;  %v1784_v14 = vrot.slane %v476_v47, 9  ;;  %v1785_v16 = vrot.slane %v477_v55, 9  ;;  %v517_v11 = vrot.slane %v2293_v50, 5  ;;  %v1901_v47 = vld [vmem:[%s2240_s22 + $0x28] sm:$0xf] }
  0x37   : > { %2003 = vmatmul.mubr.msk.bf16.gmra.mrb[4].mxu1 %vm295_vm2, %v1769_v49  ;;  %v1049_v18 = vsel %vm2382_vm6, %v1863_v54, %v1048_v59  ;;  %v1053_v21 = vsel %vm2382_vm6, %v1864_v5, %v1052_v61  ;;  %v1786_v24 = vrot.slane %v478_v4, 9  ;;  %v1787_v26 = vrot.slane %v479_v62, 9  ;;  %v2530_v53 = vld [vmem:[%s2240_s22 + $0x24] sm:$0x1]  ;;  %v2541_v5 = vld [vmem:[%s2240_s22 + $0x2c] sm:$0x1] }
  0x38   : > { %2008 = vmatprep.mubr.msk.bf16.mxu1 %vm295_vm2, %v1775_v15  ;;  %v2469_v43 = vsel %vm2382_vm6, %v1784_v14, %v505_v35  ;;  %v2475_v50 = vsel %vm2382_vm6, %v1785_v16, %v509_v40  ;;  %v1788_v19 = vrot.slane %v480_v8, 9  ;;  %v1776_v6 = vcombine.low %v2278_v33, %v2282_v38  ;;  %v2484_v35 = vld [vmem:[%s2702_s1 + $0x18] sm:$0xff]   ;;  %v2488_v40 = vld [vmem:[%s2240_s22 + $0x30] sm:$0xe]  ;;  %v2173_v8 = vld [vmem:[%s2240_s22 + $0x20] ss:$8 sps:$4 sm:$0xff]  }
  0x39   : > { %2049 = vmatmul.mubr.msk.bf16.vlgmr.msra.gmra.mrb[0].mxu0 %vm295_vm2, %v1868_v45  ;;  %v521_v7 = vrot.slane %v2325_v39, 5  ;;  %v1789_v2 = vrot.slane %v481_v3, 9  ;;  %v1870_v29 = vcombine.low %v1049_v18, %v1053_v21  ;;  %v1777_v30 = vcombine.low %v2320_v31, %v2329_v46  ;;  %v2171_v38 = vld [vmem:[%s2240_s22 + $0x10] ss:$8 sps:$4 sm:$0xff]  }
  0x3a   : > { %2057 = vmatpush3.bf16.msra.mxu0 %v2368_v22  ;;  %2052 = vmatprep.mubr.msk.bf16.mxu0 %vm295_vm2, %v1869_v56  ;;  %v1895_v22 = vld [vmem:[%s2240_s22 + $0x10] sm:$0xf]  ;;  %v1778_v33 = vcombine.low %v2341_v57, %v2351_v0  ;;  %v1794_v39 = vcombine.low %v2469_v43, %v2475_v50  ;;  %v2506_v17 = vsel %vm2382_vm6, %v1786_v24, %v513_v12  ;;  %v525_v46 = vrot.slane %v2335_v51, 5 }
  0x3b   : > { %2066 = vmatprep.subr.bf16.mxu0 %v2447_v60  ;;  %v1300_v37 = vshrl.u32 %v1895_v22, 16  ;;  %v1303_v31 = vshll.u32 %v1895_v22, 16  ;;  %v1790_v57 = vrot.slane %v2488_v40, 9  ;;  %v529_v0 = vrot.slane %v2356_v13, 5  ;;  %v2552_v40 = vld [vmem:[%s2240_s22 + $0x34] sm:$0x1] }
  0x3c   : > { %v1314_v41 = vshrl.u32 %v1897_v63, 16  ;;  %v1791_v44 = vrot.slane %v2497_v32, 9  ;;  %v1309_v15 = vshll.u32 %v2500_v23, 16  ;;  %v2523_v51 = vsel %vm2382_vm6, %v1787_v26, %v517_v11  ;;  %v2175_v11 = vld [vmem:[%s2240_s22 + $0x30] ss:$8 sps:$4 sm:$0xff]  }
  0x3d   : > { %v1302_v9 = vrot.slane %v1300_v37, 4  ;;  %v1305_v45 = vrot.slane %v1303_v31, 5  ;;  %v2527_v13 = vsel %vm2382_vm6, %v1788_v19, %v521_v7  ;;  %v1317_v52 = vshll.u32 %v1897_v63, 16  ;;  %v1905_v63 = vld [vmem:[%s2240_s22 + $0x38] sm:$0xf] }
  0x3e   : > { %v1316_v49 = vrot.slane %v1314_v41, 4  ;;  %v1323_v54 = vshll.u32 %v2509_v36, 16  ;;  %v1328_v55 = vshrl.u32 %v1899_v42, 16  ;;  %v1331_v56 = vshll.u32 %v1899_v42, 16  ;;  %v2570_v37 = vld [vmem:[%s2240_s22 + $0x3c] sm:$0x1] }
  0x3f   : > { %2009 = vmatmul.mubr.msk.bf16.vlgmr.msra.gmra.mrb[0].mxu1 %vm295_vm2, %v1776_v6  ;;  %v2538_v59 = vsel %vm2382_vm6, %v1789_v2, %v525_v46  ;;  %v1319_v4 = vrot.slane %v1317_v52, 5  ;;  %v1342_v61 = vshrl.u32 %v1901_v47, 16  ;;  %v1345_v62 = vshll.u32 %v1901_v47, 16  ;;  %v1903_v6 = vld [vmem:[%s2240_s22 + $0x30] sm:$0xf] }
  0x40   : > { %2017 = vmatpush3.bf16.msra.mxu1 %v2346_v58  ;;  %2012 = vmatprep.mubr.msk.bf16.mxu1 %vm295_vm2, %v1777_v30  ;;  %v1306_v58 = vor.u32 %v1305_v45, %v1302_v9  ;;  %v1311_v12 = vrot.slane %v1309_v15, 5  ;;  %v1330_v14 = vrot.slane %v1328_v55, 4  ;;  %v1333_v16 = vrot.slane %v1331_v56, 5  ;;  %v1907_v41 = vld [vmem:[%s2240_s22 + $0x40] sm:$0xf] }
  0x41   : > { %2053 = vmatmul.mubr.msk.bf16.gmra.mrb[4].mxu0 %vm295_vm2, %v1870_v29  ;;  %2026 = vmatprep.subr.bf16.mxu1 %v2484_v35  ;;  %v1337_v3 = vshll.u32 %v2530_v53, 16  ;;  %v1320_v21 = vor.u32 %v1319_v4, %v1316_v49  ;;  %v1344_v24 = vrot.slane %v1342_v61, 4  ;;  %v1347_v43 = vrot.slane %v1345_v62, 5  ;;  %v1909_v47 = vld [vmem:[%s2240_s22 + $0x48] sm:$0xf] }
  0x42   : > { %2058 = vmatprep.mubr.msk.bf16.mxu0 %vm295_vm2, %v2171_v38  ;;  %v1307_v18 = vrot.slane %v1306_v58, 4  ;;  %v533_v50 = vrot.slane %v2362_v20, 5  ;;  %v1325_v26 = vrot.slane %v1323_v54, 5  ;;  %v1334_v19 = vor.u32 %v1333_v16, %v1330_v14  ;;  %v2565_v38 = vld [vmem:[%s2702_s1 + $0x40] sm:$0xff]   ;;  %v2594_v62 = vld [vmem:[%s2240_s22 + $0x4c] sm:$0x1] }
  0x43   : > { %v1351_v22 = vshll.u32 %v2541_v5, 16  ;;  %v1795_v7 = vcombine.low %v2506_v17, %v2523_v51  ;;  %v1321_v2 = vrot.slane %v1320_v21, 4  ;;  %v1356_v29 = vshrl.u32 %v1903_v6, 16  ;;  %v2585_v52 = vld [vmem:[%s2240_s22 + $0x44] sm:$0x1] }
  0x44   : > { %v1796_v30 = vcombine.low %v2527_v13, %v2538_v59  ;;  %v2560_v20 = vsel %vm2382_vm6, %v1790_v57, %v529_v0  ;;  %v2567_v17 = vrot.slane %v1337_v3, 5  ;;  %v1359_v31 = vshll.u32 %v1903_v6, 16  ;;  %v2176_v58 = vld [vmem:[%s2240_s22 + $0x40] ss:$8 sps:$4 sm:$0xff]  }
  0x45   : > { %v1348_v46 = vor.u32 %v1347_v43, %v1344_v24  ;;  %v1358_v57 = vrot.slane %v1356_v29, 4  ;;  %v1370_v0 = vshrl.u32 %v1905_v63, 16  ;;  %v1326_v42 = vsel %vm2272_vm3, %v1321_v2, %v1325_v26 }
  0x46   : > { %v1335_v9 = vrot.slane %v1334_v19, 4  ;;  %v1361_v45 = vrot.slane %v1359_v31, 5  ;;  %v1365_v15 = vshll.u32 %v2552_v40, 16  ;;  %v1373_v13 = vshll.u32 %v1905_v63, 16  ;;  %v1922_v19 = vld [vmem:[%s2240_s22 + $0x10] sm:$0xe] }
  0x47   : > { %2013 = vmatmul.mubr.msk.bf16.gmra.mrb[4].mxu1 %vm295_vm2, %v1778_v33  ;;  %v1312_v33 = vsel %vm2272_vm3, %v1307_v18, %v1311_v12  ;;  %v1372_v51 = vrot.slane %v1370_v0, 4  ;;  %v1379_v49 = vshll.u32 %v2570_v37, 16  ;;  %v534_v54 = vsel %vm2382_vm6, %v1791_v44, %v533_v50  ;;  %v1832_v31 = vld [vmem:[%s2240_s22 + $0x30] sm:$0xf] }
  0x48   : > { %2018 = vmatprep.mubr.msk.bf16.mxu1 %vm295_vm2, %v1794_v39  ;;  %v1353_v39 = vrot.slane %v1351_v22, 5  ;;  %v1362_v55 = vor.u32 %v1361_v45, %v1358_v57  ;;  %v1387_v56 = vshll.u32 %v1907_v41, 16  ;;  %v1913_v59 = vcombine.low %v1312_v33, %v1326_v42  ;;  %v2178_v0 = vld [vmem:[%s2240_s22 + $0x8] ss:$8 sps:$4 sm:$0xff]  }
  0x49   : > { %2059 = vmatmul.mubr.msk.bf16.vlgmr.msra.gmra.mrb[0].mxu0 %vm295_vm2, %v2173_v8  ;;  %v1349_v4 = vrot.slane %v1348_v46, 4  ;;  %v1375_v61 = vrot.slane %v1373_v13, 5  ;;  %v1398_v8 = vshrl.u32 %v1909_v47, 16  ;;  %v1367_v12 = vrot.slane %v1365_v15, 5 }
  0x4a   : > { %2067 = vmatpush3.bf16.msra.mxu0 %v2447_v60  ;;  %2062 = vmatprep.mubr.msk.bf16.mxu0 %vm295_vm2, %v2175_v11  ;;  %v1384_v60 = vshrl.u32 %v1907_v41, 16  ;;  %v1389_v16 = vrot.slane %v1387_v56, 5  ;;  %v1401_v3 = vshll.u32 %v1909_v47, 16  ;;  %v1363_v32 = vrot.slane %v1362_v55, 4 }
  0x4b   : > { %2076 = vmatprep.subr.bf16.mxu0 %v2565_v38  ;;  %v1376_v11 = vor.u32 %v1375_v61, %v1372_v51  ;;  %v1393_v44 = vshll.u32 %v2585_v52, 16  ;;  %v1400_v18 = vrot.slane %v1398_v8, 4  ;;  %v1381_v21 = vrot.slane %v1379_v49, 5 }
  0x4c   : > { %v1386_v14 = vrot.slane %v1384_v60, 4  ;;  %v1403_v24 = vrot.slane %v1401_v3, 5  ;;  %v1407_v43 = vshll.u32 %v2594_v62, 16  ;;  %v1797_v22 = vcombine.low %v2560_v20, %v534_v54  ;;  %v1830_v20 = vld [vmem:[%s2240_s22 + $0x28] sm:$0xf] }
  0x4d   : > { %v1377_v50 = vrot.slane %v1376_v11, 4  ;;  %v1543_v2 = vrot.slane %v2500_v23, 5  ;;  %v1354_v63 = vsel %vm2272_vm3, %v1349_v4, %v1353_v39  ;;  %v1368_v29 = vsel %vm2272_vm3, %v1363_v32, %v1367_v12  ;;  %v2179_v3 = vld [vmem:[%s2240_s22 + $0x18] ss:$8 sps:$4 sm:$0xff]  }
  0x4e   : > { %v1390_v26 = vor.u32 %v1389_v16, %v1386_v14  ;;  %v1404_v6 = vor.u32 %v1403_v24, %v1400_v18  ;;  %v1409_v46 = vrot.slane %v1407_v43, 5  ;;  %v1930_v23 = vrot.slane %v1922_v19, 9  ;;  %v1834_v14 = vld [vmem:[%s2240_s22 + $0x38] sm:$0xf]  ;;  %v1836_v16 = vld [vmem:[%s2240_s22 + $0x40] sm:$0xf] }
  0x4f   : > { %2019 = vmatmul.mubr.msk.bf16.vlgmr.msra.gmra.mrb[0].mxu1 %vm295_vm2, %v1795_v7  ;;  %v1923_v7 = vld [vmem:[%s2240_s22 + $0x18] sm:$0xe]  ;;  %v1382_v33 = vsel %vm2272_vm3, %v1377_v50, %v1381_v21  ;;  %v1547_v57 = vrot.slane %v2509_v36, 5  ;;  %v840_v15 = vshll.u32 %v1830_v20, 16  ;;  %v851_v47 = vshrl.u32 %v1832_v31, 16 }
  0x50   : > { %2027 = vmatpush3.bf16.msra.mxu1 %v2484_v35  ;;  %2022 = vmatprep.mubr.msk.bf16.mxu1 %vm295_vm2, %v1796_v30  ;;  %v1340_v35 = vsel %vm2272_vm3, %v1335_v9, %v2567_v17  ;;  %v1395_v30 = vrot.slane %v1393_v44, 5  ;;  %v1391_v41 = vrot.slane %v1390_v26, 4  ;;  %v1405_v17 = vrot.slane %v1404_v6, 4  ;;  %v1924_v36 = vld [vmem:[%s2240_s22 + $0x20] sm:$0xe] }
  0x51   : > { %2063 = vmatmul.mubr.msk.bf16.gmra.mrb[4].mxu0 %vm295_vm2, %v2176_v58  ;;  %2086 = vmatprep.subr.bf16.mxu1 %v2219_v1  ;;  %v1931_v42 = vrot.slane %v1923_v7, 9  ;;  %v837_v9 = vshrl.u32 %v1830_v20, 16  ;;  %v1914_v45 = vcombine.low %v1340_v35, %v1354_v63  ;;  %v1915_v39 = vcombine.low %v1368_v29, %v1382_v33  ;;  %v1927_v50 = vld [vmem:[%s2240_s22 + $0x38] sm:$0xe]  ;;  %v2180_v26 = vld [vmem:[%s2240_s22 + $0x28] ss:$8 sps:$4 sm:$0xff]  }
  0x52   : > { %2068 = vmatprep.mubr.msk.bf16.mxu0 %vm295_vm2, %v1913_v59  ;;  %v854_v13 = vshll.u32 %v1832_v31, 16  ;;  %v1544_v49 = vsel %vm2382_vm6, %v1930_v23, %v1543_v2  ;;  %v842_v58 = vrot.slane %v840_v15, 5  ;;  %v853_v54 = vrot.slane %v851_v47, 4  ;;  %v1925_v59 = vld [vmem:[%s2240_s22 + $0x28] sm:$0xe] }
  0x53   : > { %v839_v51 = vrot.slane %v837_v9, 4  ;;  %v1396_v55 = vsel %vm2272_vm3, %v1391_v41, %v1395_v30  ;;  %v1410_v60 = vsel %vm2272_vm3, %v1405_v17, %v1409_v46  ;;  %v1548_v56 = vsel %vm2382_vm6, %v1931_v42, %v1547_v57  ;;  %v1928_v41 = vld [vmem:[%s2240_s22 + $0x40] sm:$0xe]  ;;  %v1929_v17 = vld [vmem:[%s2240_s22 + $0x48] sm:$0xe] }
  0x54   : > { %v856_v4 = vrot.slane %v854_v13, 5  ;;  %v846_v8 = vshll.u32 %v2394_v10, 16  ;;  %v860_v12 = vshll.u32 %v2404_v25, 16  ;;  %v1932_v32 = vrot.slane %v1924_v36, 9  ;;  %v1926_v10 = vld [vmem:[%s2240_s22 + $0x30] sm:$0xe] }
  0x55   : > { %v843_v61 = vor.u32 %v842_v58, %v839_v51  ;;  %v1551_v11 = vrot.slane %v2530_v53, 5  ;;  %v1916_v18 = vcombine.low %v1396_v55, %v1410_v60  ;;  %v1940_v21 = vcombine.low %v1544_v49, %v1548_v56 }
  0x56   : > { %v857_v44 = vor.u32 %v856_v4, %v853_v54  ;;  %v1933_v24 = vrot.slane %v1925_v59, 9  ;;  %v1555_v43 = vrot.slane %v2541_v5, 5  ;;  %v865_v25 = vshrl.u32 %v1834_v14, 16 }
  0x57   : > { %2023 = vmatmul.mubr.msk.bf16.gmra.mrb[4].mxu1 %vm295_vm2, %v1797_v22  ;;  %v868_v19 = vshll.u32 %v1834_v14, 16  ;;  %v879_v22 = vshrl.u32 %v1836_v16, 16  ;;  %v882_v6 = vshll.u32 %v1836_v16, 16  ;;  %v848_v7 = vrot.slane %v846_v8, 5 }
  0x58   : > { %2028 = vmatprep.mubr.msk.bf16.mxu1 %vm295_vm2, %v2178_v0  ;;  %v858_v2 = vrot.slane %v857_v44, 4  ;;  %v862_v35 = vrot.slane %v860_v12, 5  ;;  %v1934_v63 = vrot.slane %v1926_v10, 9  ;;  %v1559_v53 = vrot.slane %v2552_v40, 5  ;;  %v2181_v0 = vld [vmem:[%s2240_s22 + $0x38] ss:$8 sps:$4 sm:$0xff]  }
  0x59   : > { %2069 = vmatmul.mubr.msk.bf16.vlgmr.msra.gmra.mrb[0].mxu0 %vm295_vm2, %v1914_v45  ;;  %v1935_v29 = vrot.slane %v1927_v50, 9  ;;  %v1563_v30 = vrot.slane %v2570_v37, 5  ;;  %v867_v5 = vrot.slane %v865_v25, 4  ;;  %v870_v20 = vrot.slane %v868_v19, 5 }
  0x5a   : > { %2077 = vmatpush3.bf16.msra.mxu0 %v2565_v38  ;;  %2072 = vmatprep.mubr.msk.bf16.mxu0 %vm295_vm2, %v1915_v39  ;;  %v844_v38 = vrot.slane %v843_v61, 4  ;;  %v881_v31 = vrot.slane %v879_v22, 4  ;;  %v884_v33 = vrot.slane %v882_v6, 5  ;;  %v874_v46 = vshll.u32 %v2412_v27, 16 }
  0x5b   : > { %v863_v37 = vsel %vm2272_vm3, %v858_v2, %v862_v35  ;;  %v1556_v23 = vsel %vm2382_vm6, %v1933_v24, %v1555_v43  ;;  %v1560_v57 = vsel %vm2382_vm6, %v1934_v63, %v1559_v53  ;;  %v1564_v27 = vsel %vm2382_vm6, %v1935_v29, %v1563_v30 }
  0x5c   : > { %v849_v40 = vsel %vm2272_vm3, %v844_v38, %v848_v7  ;;  %v888_v42 = vshll.u32 %v2422_v34, 16  ;;  %v871_v45 = vor.u32 %v870_v20, %v867_v5  ;;  %v885_v15 = vor.u32 %v884_v33, %v881_v31 }
  0x5d   : > { %v1842_v9 = vcombine.low %v849_v40, %v863_v37  ;;  %v1942_v39 = vcombine.low %v1560_v57, %v1564_v27  ;;  %v1936_v51 = vrot.slane %v1928_v41, 9  ;;  %v1567_v13 = vrot.slane %v2585_v52, 5 }
  0x5e   : > { %v1937_v49 = vrot.slane %v1929_v17, 9  ;;  %v1571_v36 = vrot.slane %v2594_v62, 5  ;;  %v876_v58 = vrot.slane %v874_v46, 5  ;;  %v890_v54 = vrot.slane %v888_v42, 5 }
  0x5f   : > { %2029 = vmatmul.mubr.msk.bf16.vlgmr.msra.gmra.mrb[0].mxu1 %vm295_vm2, %v2179_v3  ;;  %v872_v55 = vrot.slane %v871_v45, 4  ;;  %v886_v60 = vrot.slane %v885_v15, 4  ;;  %v1568_v34 = vsel %vm2382_vm6, %v1936_v51, %v1567_v13 }
  0x60   : > { %2087 = vmatpush3.bf16.msra.mxu1 %v2219_v1  ;;  %2032 = vmatprep.mubr.msk.bf16.mxu1 %vm295_vm2, %v2180_v26  ;;  %v1552_v1 = vsel %vm2382_vm6, %v1932_v32, %v1551_v11  ;;  %v1572_v52 = vsel %vm2382_vm6, %v1937_v49, %v1571_v36 }
  0x61   : > { %2073 = vmatmul.mubr.msk.bf16.gmra.mrb[4].mxu0 %vm295_vm2, %v1916_v18  ;;  %v1941_v47 = vcombine.low %v1552_v1, %v1556_v23  ;;  %v877_v62 = vsel %vm2272_vm3, %v872_v55, %v876_v58  ;;  %v891_v56 = vsel %vm2272_vm3, %v886_v60, %v890_v54  ;;  %v1943_v59 = vcombine.low %v1568_v34, %v1572_v52 }
  0x62   : > { %2078 = vmatprep.mubr.msk.bf16.mxu0 %vm295_vm2, %v1940_v21  ;;  %v1843_v4 = vcombine.low %v877_v62, %v891_v56 }
  0x67   : > { %2033 = vmatmul.mubr.msk.bf16.gmra.mrb[4].mxu1 %vm295_vm2, %v2181_v0 }
  0x68   : > { %2042 = vmatprep.mubr.msk.bf16.mxu1 %vm295_vm2, %v1842_v9 }
  0x69   : > { %2079 = vmatmul.mubr.msk.bf16.vlgmr.msra.gmra.mrb[0].mxu0 %vm295_vm2, %v1941_v47 }
  0x6a   : > { %2082 = vmatprep.mubr.msk.bf16.mxu0 %vm295_vm2, %v1942_v39 }
  0x71   : > { %2083 = vmatmul.mubr.msk.bf16.gmra.mrb[4].mxu0 %vm295_vm2, %v1943_v59 }
  0x73   : > { %2043 = vmatmul.mubr.msk.bf16.vlgmr.msra.gmra.mrb[4].mxu1 %vm295_vm2, %v1843_v4 }
 0x132   : > { %v2030_v61 = vpop.f32.mrb[0].mxu1 }
 0x133   : > { %v725_v8 = vpop.f32.mrb[1].mxu1 }
 0x134   : > { %v2031_v12 = vpop.f32.mrb[2].mxu1 }
 0x135   : > { %v728_v14 = vpop.f32.mrb[3].mxu1 }
 0x13c   : > { %v2080_v16 = vpop.f32.mrb[0].mxu0 }
 0x13d   : > { %v2088_v3 = vadd.f32 %v2080_v16, %v2030_v61  ;;  %v1640_v48 = vpop.f32.mrb[1].mxu0 }
 0x13e   : > { %v2089_v32 = vadd.f32 %v1640_v48, %v725_v8  ;;  %v2081_v11 = vpop.f32.mrb[2].mxu0 }
 0x13f   : > { %v2090_v44 = vadd.f32 %v2081_v11, %v2031_v12  ;;  %v1643_v18 = vpop.f32.mrb[3].mxu0  ;;  %v1681_v50 = vmax.f32 %v2088_v3, 0.0 }
 0x140   : > { %v2091_v21 = vadd.f32 %v1643_v18, %v728_v14  ;;  %v1679_v22 = vmax.f32 %v2089_v32, 0.0 }
 0x141   : > { %v1682_v7 = vmax.f32 %v2090_v44, 0.0  ;;  %v1690_v5 = vsel %vm1687_vm7, %v1681_v50, -inf }
 0x142   : > { %v1680_v53 = vmax.f32 %v2091_v21, 0.0  ;;  %v1688_v33 = vsel %vm1687_vm7, %v1679_v22, -inf }
 0x143   : > { %v1691_v1 = vsel %vm1687_vm7, %v1682_v7, -inf }
 0x144   : > { %v2084_v28 = vpop.f32.mrb[4].mxu0  ;;  %v1689_v27 = vsel %vm1687_vm7, %v1680_v53, -inf }
 0x145   : > { %v1656_v24 = vpop.f32.mrb[5].mxu0 }
 0x146   : > { %v2044_v43 = vpop.f32.mrb[4].mxu1  ;;  %v2085_v10 = vpop.f32.mrb[6].mxu0 }
 0x147   : > { %v2092_v26 = vadd.f32 %v2084_v28, %v2044_v43  ;;  %v975_v25 = vpop.f32.mrb[5].mxu1  ;;  %v1659_v19 = vpop.f32.mrb[7].mxu0 }
 0x148   : > { %v2093_v6 = vadd.f32 %v1656_v24, %v975_v25  ;;  %v2045_v38 = vpop.f32.mrb[6].mxu1 }
 0x149   : > { %v1685_v2 = vmax.f32 %v2092_v26, 0.0  ;;  %v2094_v35 = vadd.f32 %v2085_v10, %v2045_v38  ;;  %v978_v63 = vpop.f32.mrb[7].mxu1 }
 0x14a   : > { %v1683_v29 = vmax.f32 %v2093_v6, 0.0  ;;  %v2095_v30 = vadd.f32 %v1659_v19, %v978_v63 }
 0x14b   : > { %v1696_v20 = vsel %vm1687_vm7, %v1685_v2, -inf  ;;  %v1686_v31 = vmax.f32 %v2094_v35, 0.0 }
 0x14c   : > { %v1697_v46 = vmax.f32 %v1690_v5, %v1696_v20  ;;  %v1692_v40 = vsel %vm1687_vm7, %v1683_v29, -inf  ;;  %v1684_v37 = vmax.f32 %v2095_v30, 0.0 }
 0x14d   : > { %v1693_v23 = vmax.f32 %v1688_v33, %v1692_v40  ;;  %v1698_v57 = vsel %vm1687_vm7, %v1686_v31, -inf }
 0x14e   : > { %v1699_v0 = vmax.f32 %v1691_v1, %v1698_v57  ;;  %v1694_v41 = vsel %vm1687_vm7, %v1684_v37, -inf }
 0x14f   : > { %v1695_v17 = vmax.f32 %v1689_v27, %v1694_v41 }
 0x150   : > { %v1701_v42 = vmax.f32 %v1697_v46, %v1699_v0 }
 0x151   : > { %v1700_v9 = vmax.f32 %v1693_v23, %v1695_v17 }
 0x153   : > { %v1702_v45 = vmax.f32 %v1700_v9, %v1701_v42 }
 0x155   : > { %v1703_v15 = vrot.slane %v1702_v45, 4 }
 0x157   : > { %v1704_v47 = vmax.f32 %v1702_v45, %v1703_v15 }
 0x159   : > { %v1705_v39 = vrot.slane %v1704_v47, 2 }
 0x15b   : > { %v1706_v51 = vmax.f32 %v1704_v47, %v1705_v39 }
 0x15d   : > { %v1707_v13 = vrot.slane %v1706_v51, 1 }
 0x15f   : > { %v1708_v49 = vmax.f32 %v1706_v51, %v1707_v13 }
 0x161   : > { %1710 = vst.msk [vmem:[%s139_s7] sm:$0x1] %vm1709_vm8, %v1708_v49 }
 0x162 PF: > { %s12_s9 = sadd.s32 1, %s2188_s9  }
 0x163   : > { %p9_p4 = scmp.ge.s32.totalorder %s12_s9, 4  }
 0x165   :  { %11 = sbr.rel (!%p9_p4) target bundleno = 1 (0x1), region = 68 }

</bundles_post_ra>
